<compile_context>
chip_gen: v7x
topology: tpu7x:2x2x1
jax: 0.10.0
libtpu: 0.0.40
codegen_flags: <defaults>
</compile_context>

<pallas_src>
import functools

import jax
import jax.numpy as jnp
from jax import lax
from jax.experimental import pallas as pl
from jax.experimental.pallas import tpu as pltpu

_LANES = 128
_SUBLANES = 8


def _cdiv(a, b):
    return -(-a // b)


def _round_up(a, b):
    return _cdiv(a, b) * b


def _led_kernel(x_ref, colors_ref, val_ref, idx_ref, run_min_ref, run_idx_ref,
                *, hw, r_state, mask_tail, compute_dtype):
    # x_ref:       (1, C, R_TILE, 128)  VMEM  -- one spatial tile (native dtype)
    # colors_ref:  (NC, C)              SMEM  -- scalar reads
    # val_ref:     (1, 1, NC, 1)        VMEM  -- per-(image, split) min value
    # idx_ref:     (1, 1, NC, 1)        VMEM  -- per-(image, split) flat argmin
    # run_min_ref: (NC, R_STATE, 128)   VMEM  -- per-lane-column running min
    # run_idx_ref: (NC, R_STATE, 128)   VMEM  -- per-lane-column running argmin
    s = pl.program_id(1)
    t = pl.program_id(2)
    num_t = pl.num_programs(2)
    _, C, R, L = x_ref.shape
    NC = colors_ref.shape[0]
    n_sub = R // r_state

    @pl.when(t == 0)
    def _init():
        run_min_ref[...] = jnp.full(run_min_ref.shape, jnp.inf, run_min_ref.dtype)
        run_idx_ref[...] = jnp.zeros(run_idx_ref.shape, run_idx_ref.dtype)

    row_i = lax.broadcasted_iota(jnp.int32, (r_state, L), 0)
    lane_i = lax.broadcasted_iota(jnp.int32, (r_state, L), 1)
    tile_row0 = (s * num_t + t) * R  # first (rows,128)-row covered by this tile

    for sub in range(n_sub):  # static, small (r_tile // r_state)
        # Flat index over the original H*W plane of every element in this chunk.
        flat = (tile_row0 + sub * r_state + row_i) * L + lane_i

        # Channel-outer / color-inner: each channel slab is read from VMEM once
        # and reused for all NC colors.
        diffs = [None] * NC
        for c in range(C):
            ch = x_ref[0, c, pl.ds(sub * r_state, r_state), :].astype(compute_dtype)
            for ci in range(NC):
                d = jnp.abs(ch - colors_ref[ci, c].astype(compute_dtype))
                diffs[ci] = d if diffs[ci] is None else diffs[ci] + d

        for ci in range(NC):
            diff = diffs[ci].astype(jnp.float32)
            prev_min = run_min_ref[ci]
            prev_idx = run_idx_ref[ci]
            # Strict < keeps the earliest (= smallest flat index) occurrence per
            # lane column, matching torch.argmin first-occurrence tie-breaking.
            better = diff < prev_min
            if mask_tail:
                # Only needed for non-float inputs, where padding cannot use an
                # +inf sentinel.
                better = jnp.logical_and(better, flat < hw)
            run_min_ref[ci] = jnp.where(better, diff, prev_min)
            run_idx_ref[ci] = jnp.where(better, flat, prev_idx)

    @pl.when(t == num_t - 1)
    def _finalize():
        sentinel = jnp.int32(jnp.iinfo(jnp.int32).max)
        color_row = lax.broadcasted_iota(jnp.int32, (NC, 1), 0)
        vals = jnp.zeros((NC, 1), jnp.float32)
        idxs = jnp.zeros((NC, 1), jnp.int32)
        for ci in range(NC):
            rm = run_min_ref[ci]
            gmin = jnp.min(rm)
            masked = jnp.where(rm == gmin, run_idx_ref[ci], sentinel)
            gidx = jnp.min(masked)  # smallest flat index achieving the min
            vals = jnp.where(color_row == ci, gmin, vals)
            idxs = jnp.where(color_row == ci, gidx, idxs)
        val_ref[0, 0] = vals
        idx_ref[0, 0] = idxs


def led_detector(X, colors, *, max_tile_rows=1024, max_state_rows=512,
                 num_spatial_splits=None, compute_dtype=jnp.float32):
    """Pallas equivalent of LedDetector.forward.

    X:      (B, C, H, W) or (C, H, W); streamed in its native dtype and cast to
            `compute_dtype` per tile inside the kernel.
    colors: (NC, C), cast to float32 (matches the module buffer dtype).
    returns (B, NC, 2) float32 with [y, x] of the best-matching pixel.
    """
    X = jnp.asarray(X)
    if X.dtype == jnp.float64:
        X = X.astype(jnp.float32)
    if X.ndim == 3:
        X = X[None]
    colors = jnp.asarray(colors, dtype=jnp.float32)

    B, C, H, W = X.shape
    NC = colors.shape[0]
    assert colors.shape == (NC, C)
    HW = H * W

    # ---- tiling -------------------------------------------------------------
    rows_min = _cdiv(HW, _LANES)
    r_tile = min(max_tile_rows, _round_up(rows_min, _SUBLANES))
    r_tile = max(_SUBLANES, (r_tile // _SUBLANES) * _SUBLANES)
    # Running-state scratch is fixed-size (decoupled from the input tile); the
    # kernel loops over r_tile // r_state sub-chunks.
    r_state = next(c for c in (max_state_rows, 512, 256, 128, 64, 32, 16, _SUBLANES)
                   if c <= r_tile and r_tile % c == 0)
    if num_spatial_splits is None:
        # Keep both v7x TensorCores busy even for single-image calls.
        nsplit = 2 if (B == 1 and rows_min > r_tile) else 1
    else:
        nsplit = max(1, int(num_spatial_splits))
    rows = _round_up(rows_min, r_tile * nsplit)
    hw_pad = rows * _LANES
    num_tiles = rows // r_tile
    tiles_per_split = num_tiles // nsplit
    assert hw_pad < 2**31, "flat spatial index must fit in int32"

    # ---- lane-dense layout + sentinel padding -------------------------------
    Xf = X.reshape(B, C, HW)
    mask_tail = False
    if hw_pad != HW:
        if jnp.issubdtype(X.dtype, jnp.floating):
            # +inf sentinel: padded pixels have infinite diff and can never win
            # the argmin, so no per-element validity mask is needed in-kernel.
            pad_val = jnp.inf
        else:
            # Integer inputs: no safe sentinel; mask the padded tail in-kernel.
            pad_val = 0
            mask_tail = True
        Xf = jnp.pad(Xf, ((0, 0), (0, 0), (0, hw_pad - HW)),
                     constant_values=pad_val)
    Xr = Xf.reshape(B, C, rows, _LANES)

    kernel = functools.partial(
        _led_kernel, hw=HW, r_state=r_state, mask_tail=mask_tail,
        compute_dtype=compute_dtype)

    vals, idxs = pl.pallas_call(
        kernel,
        out_shape=(
            jax.ShapeDtypeStruct((B, nsplit, NC, 1), jnp.float32),
            jax.ShapeDtypeStruct((B, nsplit, NC, 1), jnp.int32),
        ),
        grid=(B, nsplit, tiles_per_split),
        in_specs=[
            pl.BlockSpec((1, C, r_tile, _LANES),
                         lambda b, s, t: (b, 0, s * tiles_per_split + t, 0)),
            pl.BlockSpec(memory_space=pltpu.SMEM),
        ],
        out_specs=(
            pl.BlockSpec((1, 1, NC, 1), lambda b, s, t: (b, s, 0, 0)),
            pl.BlockSpec((1, 1, NC, 1), lambda b, s, t: (b, s, 0, 0)),
        ),
        scratch_shapes=[
            pltpu.VMEM((NC, r_state, _LANES), jnp.float32),
            pltpu.VMEM((NC, r_state, _LANES), jnp.int32),
        ],
        compiler_params=pltpu.CompilerParams(
            dimension_semantics=("parallel", "parallel", "arbitrary")),
    )(Xr, colors)

    # ---- combine per-split partials (tiny, runs in XLA) ---------------------
    vals = vals[..., 0]                          # (B, NS, NC)
    idxs = idxs[..., 0]                          # (B, NS, NC)
    # argmin's first-occurrence tie-break = earliest split = smallest flat idx.
    best_split = jnp.argmin(vals, axis=1)        # (B, NC)
    idx = jnp.take_along_axis(idxs, best_split[:, None, :], axis=1)[:, 0, :]
    y = (idx // W).astype(jnp.float32)
    x = (idx % W).astype(jnp.float32)
    return jnp.stack([y, x], axis=-1)            # (B, NC, 2)


def _reference(X, colors):
    # Pure-JAX reference mirroring the PyTorch loop semantics.
    X = jnp.asarray(X, dtype=jnp.float32)
    if X.ndim == 3:
        X = X[None]
    B, C, H, W = X.shape
    img_hwc = jnp.transpose(X, (0, 2, 3, 1))                                # (B, H, W, C)
    diff = jnp.abs(img_hwc[:, None] - colors[None, :, None, None]).sum(-1)  # (B, NC, H, W)
    flat = diff.reshape(B, colors.shape[0], H * W)
    idx = jnp.argmin(flat, axis=-1)
    y = (idx // W).astype(jnp.float32)
    x = (idx % W).astype(jnp.float32)
    return jnp.stack([y, x], axis=-1)                                       # (B, NC, 2)


if __name__ == "__main__":
    key = jax.random.PRNGKey(0)
    k0, k1 = jax.random.split(key)

    # Default COLORS buffer from the module's __init__.
    COLORS = jnp.array(
        [[1.0, 0.0, 0.0],
         [0.0, 0.0, 1.0],
         [1.0, 0.0, 1.0]], dtype=jnp.float32)

    # Primary check: small batched image.
    B, C, H, W = 2, 3, 16, 16
    X = jax.random.uniform(k0, (B, C, H, W), dtype=jnp.float32)
    out = led_detector(X, COLORS)
    jax.block_until_ready(out)
    ref = _reference(X, COLORS)
    assert out.shape == (B, 3, 2), out.shape
    assert jnp.allclose(out, ref), (out, ref)

    # Secondary check: odd spatial size (exercises +inf sentinel padding) and a
    # forced spatial split (exercises the multi-split combine path).
    X2 = jax.random.uniform(k1, (1, 3, 13, 10), dtype=jnp.float32)
    out2 = led_detector(X2, COLORS, num_spatial_splits=2)
    jax.block_until_ready(out2)
    ref2 = _reference(X2, COLORS)
    assert jnp.allclose(out2, ref2), (out2, ref2)

    print("KERNEL_OK")
</pallas_src>

<mosaic_0001>
module attributes {stable_mosaic.version = 11 : i64} {
  func.func @_led_kernel(%arg0: i32, %arg1: i32, %arg2: i32, %arg3: memref<1x3x8x128xf32, #tpu.memory_space<vmem>>, %arg4: memref<3x3xf32, #tpu.memory_space<smem>>, %arg5: memref<1x1x3x1xf32, #tpu.memory_space<vmem>>, %arg6: memref<1x1x3x1xi32, #tpu.memory_space<vmem>>, %arg7: memref<3x8x128xf32, #tpu.memory_space<vmem>>, %arg8: memref<3x8x128xi32, #tpu.memory_space<vmem>>) attributes {dimension_semantics = [#tpu.dimension_semantics<parallel>, #tpu.dimension_semantics<parallel>, #tpu.dimension_semantics<arbitrary>], iteration_bounds = array<i64: 2, 1, 1>, scalar_prefetch = 0 : i64, scratch_operands = 2 : i64, tpu.core_type = #tpu.core_type<tc>, window_params = [{transform_indices = @transform_0, window_bounds = array<i64: 1, 3, 8, 128>}, {transform_indices = @transform_1, window_bounds = array<i64: 3, 3>}, {transform_indices = @transform_2, window_bounds = array<i64: 1, 1, 3, 1>}, {transform_indices = @transform_3, window_bounds = array<i64: 1, 1, 3, 1>}]} {
    %c0_i32 = arith.constant 0 : i32
    %0 = arith.cmpi eq, %arg2, %c0_i32 : i32
    %1 = arith.extui %0 : i1 to i32
    %c0_i32_0 = arith.constant 0 : i32
    %2 = arith.cmpi ne, %1, %c0_i32_0 : i32
    scf.if %2 {
      %cst = arith.constant 0x7F800000 : f32
      %104 = vector.broadcast %cst : f32 to vector<3x8x128xf32>
      %c0_67 = arith.constant 0 : index
      %c0_68 = arith.constant 0 : index
      %c0_69 = arith.constant 0 : index
      %105 = vector.load %arg7[%c0_67, %c0_68, %c0_69] : memref<3x8x128xf32, #tpu.memory_space<vmem>>, vector<3x8x128xf32>
      tpu.vector_store %arg7[%c0_67, %c0_68, %c0_69], %104 {strides = array<i32>} : memref<3x8x128xf32, #tpu.memory_space<vmem>>, vector<3x8x128xf32>,
      %c0_i32_70 = arith.constant 0 : i32
      %106 = vector.broadcast %c0_i32_70 : i32 to vector<3x8x128xi32>
      %c0_71 = arith.constant 0 : index
      %c0_72 = arith.constant 0 : index
      %c0_73 = arith.constant 0 : index
      %107 = vector.load %arg8[%c0_71, %c0_72, %c0_73] : memref<3x8x128xi32, #tpu.memory_space<vmem>>, vector<3x8x128xi32>
      tpu.vector_store %arg8[%c0_71, %c0_72, %c0_73], %106 {strides = array<i32>} : memref<3x8x128xi32, #tpu.memory_space<vmem>>, vector<3x8x128xi32>,
    } else {
    }
    %3 = tpu.iota {dimensions = array<i32: 0>} : vector<8x128xi32>
    %4 = tpu.iota {dimensions = array<i32: 1>} : vector<8x128xi32>
    %c1_i32 = arith.constant 1 : i32
    %5 = arith.muli %arg1, %c1_i32 : i32
    %6 = arith.addi %5, %arg2 : i32
    %c8_i32 = arith.constant 8 : i32
    %7 = arith.muli %6, %c8_i32 : i32
    %c0_i32_1 = arith.constant 0 : i32
    %8 = arith.addi %7, %c0_i32_1 : i32
    %9 = vector.broadcast %8 : i32 to vector<8x128xi32>
    %10 = arith.addi %9, %3 : vector<8x128xi32>
    %c128_i32 = arith.constant 128 : i32
    %11 = vector.broadcast %c128_i32 : i32 to vector<8x128xi32>
    %12 = arith.muli %10, %11 : vector<8x128xi32>
    %13 = arith.addi %12, %4 : vector<8x128xi32>
    %c0 = arith.constant 0 : index
    %c0_2 = arith.constant 0 : index
    %c0_3 = arith.constant 0 : index
    %c0_4 = arith.constant 0 : index
    %14 = vector.load %arg3[%c0, %c0_2, %c0_3, %c0_4] : memref<1x3x8x128xf32, #tpu.memory_space<vmem>>, vector<1x1x8x128xf32>
    %15 = vector.shape_cast %14 : vector<1x1x8x128xf32> to vector<8x128xf32>
    %c0_5 = arith.constant 0 : index
    %c0_6 = arith.constant 0 : index
    %16 = memref.load %arg4[%c0_5, %c0_6] : memref<3x3xf32, #tpu.memory_space<smem>>
    %17 = vector.broadcast %16 : f32 to vector<8x128xf32>
    %18 = arith.subf %15, %17 : vector<8x128xf32>
    %19 = math.absf %18 : vector<8x128xf32>
    %c1 = arith.constant 1 : index
    %c0_7 = arith.constant 0 : index
    %20 = memref.load %arg4[%c1, %c0_7] : memref<3x3xf32, #tpu.memory_space<smem>>
    %21 = vector.broadcast %20 : f32 to vector<8x128xf32>
    %22 = arith.subf %15, %21 : vector<8x128xf32>
    %23 = math.absf %22 : vector<8x128xf32>
    %c2 = arith.constant 2 : index
    %c0_8 = arith.constant 0 : index
    %24 = memref.load %arg4[%c2, %c0_8] : memref<3x3xf32, #tpu.memory_space<smem>>
    %25 = vector.broadcast %24 : f32 to vector<8x128xf32>
    %26 = arith.subf %15, %25 : vector<8x128xf32>
    %27 = math.absf %26 : vector<8x128xf32>
    %c0_9 = arith.constant 0 : index
    %c1_10 = arith.constant 1 : index
    %c0_11 = arith.constant 0 : index
    %c0_12 = arith.constant 0 : index
    %28 = vector.load %arg3[%c0_9, %c1_10, %c0_11, %c0_12] : memref<1x3x8x128xf32, #tpu.memory_space<vmem>>, vector<1x1x8x128xf32>
    %29 = vector.shape_cast %28 : vector<1x1x8x128xf32> to vector<8x128xf32>
    %c0_13 = arith.constant 0 : index
    %c1_14 = arith.constant 1 : index
    %30 = memref.load %arg4[%c0_13, %c1_14] : memref<3x3xf32, #tpu.memory_space<smem>>
    %31 = vector.broadcast %30 : f32 to vector<8x128xf32>
    %32 = arith.subf %29, %31 : vector<8x128xf32>
    %33 = math.absf %32 : vector<8x128xf32>
    %34 = arith.addf %19, %33 : vector<8x128xf32>
    %c1_15 = arith.constant 1 : index
    %c1_16 = arith.constant 1 : index
    %35 = memref.load %arg4[%c1_15, %c1_16] : memref<3x3xf32, #tpu.memory_space<smem>>
    %36 = vector.broadcast %35 : f32 to vector<8x128xf32>
    %37 = arith.subf %29, %36 : vector<8x128xf32>
    %38 = math.absf %37 : vector<8x128xf32>
    %39 = arith.addf %23, %38 : vector<8x128xf32>
    %c2_17 = arith.constant 2 : index
    %c1_18 = arith.constant 1 : index
    %40 = memref.load %arg4[%c2_17, %c1_18] : memref<3x3xf32, #tpu.memory_space<smem>>
    %41 = vector.broadcast %40 : f32 to vector<8x128xf32>
    %42 = arith.subf %29, %41 : vector<8x128xf32>
    %43 = math.absf %42 : vector<8x128xf32>
    %44 = arith.addf %27, %43 : vector<8x128xf32>
    %c0_19 = arith.constant 0 : index
    %c2_20 = arith.constant 2 : index
    %c0_21 = arith.constant 0 : index
    %c0_22 = arith.constant 0 : index
    %45 = vector.load %arg3[%c0_19, %c2_20, %c0_21, %c0_22] : memref<1x3x8x128xf32, #tpu.memory_space<vmem>>, vector<1x1x8x128xf32>
    %46 = vector.shape_cast %45 : vector<1x1x8x128xf32> to vector<8x128xf32>
    %c0_23 = arith.constant 0 : index
    %c2_24 = arith.constant 2 : index
    %47 = memref.load %arg4[%c0_23, %c2_24] : memref<3x3xf32, #tpu.memory_space<smem>>
    %48 = vector.broadcast %47 : f32 to vector<8x128xf32>
    %49 = arith.subf %46, %48 : vector<8x128xf32>
    %50 = math.absf %49 : vector<8x128xf32>
    %51 = arith.addf %34, %50 : vector<8x128xf32>
    %c1_25 = arith.constant 1 : index
    %c2_26 = arith.constant 2 : index
    %52 = memref.load %arg4[%c1_25, %c2_26] : memref<3x3xf32, #tpu.memory_space<smem>>
    %53 = vector.broadcast %52 : f32 to vector<8x128xf32>
    %54 = arith.subf %46, %53 : vector<8x128xf32>
    %55 = math.absf %54 : vector<8x128xf32>
    %56 = arith.addf %39, %55 : vector<8x128xf32>
    %c2_27 = arith.constant 2 : index
    %c2_28 = arith.constant 2 : index
    %57 = memref.load %arg4[%c2_27, %c2_28] : memref<3x3xf32, #tpu.memory_space<smem>>
    %58 = vector.broadcast %57 : f32 to vector<8x128xf32>
    %59 = arith.subf %46, %58 : vector<8x128xf32>
    %60 = math.absf %59 : vector<8x128xf32>
    %61 = arith.addf %44, %60 : vector<8x128xf32>
    %c0_29 = arith.constant 0 : index
    %c0_30 = arith.constant 0 : index
    %c0_31 = arith.constant 0 : index
    %62 = vector.load %arg7[%c0_29, %c0_30, %c0_31] : memref<3x8x128xf32, #tpu.memory_space<vmem>>, vector<1x8x128xf32>
    %63 = vector.shape_cast %62 : vector<1x8x128xf32> to vector<8x128xf32>
    %c0_32 = arith.constant 0 : index
    %c0_33 = arith.constant 0 : index
    %c0_34 = arith.constant 0 : index
    %64 = vector.load %arg8[%c0_32, %c0_33, %c0_34] : memref<3x8x128xi32, #tpu.memory_space<vmem>>, vector<1x8x128xi32>
    %65 = vector.shape_cast %64 : vector<1x8x128xi32> to vector<8x128xi32>
    %66 = arith.cmpf olt, %51, %63 : vector<8x128xf32>
    %67 = arith.select %66, %51, %63 : vector<8x128xi1>, vector<8x128xf32>
    %c0_35 = arith.constant 0 : index
    %c0_36 = arith.constant 0 : index
    %c0_37 = arith.constant 0 : index
    %68 = vector.load %arg7[%c0_35, %c0_36, %c0_37] : memref<3x8x128xf32, #tpu.memory_space<vmem>>, vector<1x8x128xf32>
    %69 = vector.shape_cast %68 : vector<1x8x128xf32> to vector<8x128xf32>
    %70 = vector.shape_cast %67 : vector<8x128xf32> to vector<1x8x128xf32>
    tpu.vector_store %arg7[%c0_35, %c0_36, %c0_37], %70 {strides = array<i32>} : memref<3x8x128xf32, #tpu.memory_space<vmem>>, vector<1x8x128xf32>,
    %71 = arith.select %66, %13, %65 : vector<8x128xi1>, vector<8x128xi32>
    %c0_38 = arith.constant 0 : index
    %c0_39 = arith.constant 0 : index
    %c0_40 = arith.constant 0 : index
    %72 = vector.load %arg8[%c0_38, %c0_39, %c0_40] : memref<3x8x128xi32, #tpu.memory_space<vmem>>, vector<1x8x128xi32>
    %73 = vector.shape_cast %72 : vector<1x8x128xi32> to vector<8x128xi32>
    %74 = vector.shape_cast %71 : vector<8x128xi32> to vector<1x8x128xi32>
    tpu.vector_store %arg8[%c0_38, %c0_39, %c0_40], %74 {strides = array<i32>} : memref<3x8x128xi32, #tpu.memory_space<vmem>>, vector<1x8x128xi32>,
    %c1_41 = arith.constant 1 : index
    %c0_42 = arith.constant 0 : index
    %c0_43 = arith.constant 0 : index
    %75 = vector.load %arg7[%c1_41, %c0_42, %c0_43] : memref<3x8x128xf32, #tpu.memory_space<vmem>>, vector<1x8x128xf32>
    %76 = vector.shape_cast %75 : vector<1x8x128xf32> to vector<8x128xf32>
    %c1_44 = arith.constant 1 : index
    %c0_45 = arith.constant 0 : index
    %c0_46 = arith.constant 0 : index
    %77 = vector.load %arg8[%c1_44, %c0_45, %c0_46] : memref<3x8x128xi32, #tpu.memory_space<vmem>>, vector<1x8x128xi32>
    %78 = vector.shape_cast %77 : vector<1x8x128xi32> to vector<8x128xi32>
    %79 = arith.cmpf olt, %56, %76 : vector<8x128xf32>
    %80 = arith.select %79, %56, %76 : vector<8x128xi1>, vector<8x128xf32>
    %c1_47 = arith.constant 1 : index
    %c0_48 = arith.constant 0 : index
    %c0_49 = arith.constant 0 : index
    %81 = vector.load %arg7[%c1_47, %c0_48, %c0_49] : memref<3x8x128xf32, #tpu.memory_space<vmem>>, vector<1x8x128xf32>
    %82 = vector.shape_cast %81 : vector<1x8x128xf32> to vector<8x128xf32>
    %83 = vector.shape_cast %80 : vector<8x128xf32> to vector<1x8x128xf32>
    tpu.vector_store %arg7[%c1_47, %c0_48, %c0_49], %83 {strides = array<i32>} : memref<3x8x128xf32, #tpu.memory_space<vmem>>, vector<1x8x128xf32>,
    %84 = arith.select %79, %13, %78 : vector<8x128xi1>, vector<8x128xi32>
    %c1_50 = arith.constant 1 : index
    %c0_51 = arith.constant 0 : index
    %c0_52 = arith.constant 0 : index
    %85 = vector.load %arg8[%c1_50, %c0_51, %c0_52] : memref<3x8x128xi32, #tpu.memory_space<vmem>>, vector<1x8x128xi32>
    %86 = vector.shape_cast %85 : vector<1x8x128xi32> to vector<8x128xi32>
    %87 = vector.shape_cast %84 : vector<8x128xi32> to vector<1x8x128xi32>
    tpu.vector_store %arg8[%c1_50, %c0_51, %c0_52], %87 {strides = array<i32>} : memref<3x8x128xi32, #tpu.memory_space<vmem>>, vector<1x8x128xi32>,
    %c2_53 = arith.constant 2 : index
    %c0_54 = arith.constant 0 : index
    %c0_55 = arith.constant 0 : index
    %88 = vector.load %arg7[%c2_53, %c0_54, %c0_55] : memref<3x8x128xf32, #tpu.memory_space<vmem>>, vector<1x8x128xf32>
    %89 = vector.shape_cast %88 : vector<1x8x128xf32> to vector<8x128xf32>
    %c2_56 = arith.constant 2 : index
    %c0_57 = arith.constant 0 : index
    %c0_58 = arith.constant 0 : index
    %90 = vector.load %arg8[%c2_56, %c0_57, %c0_58] : memref<3x8x128xi32, #tpu.memory_space<vmem>>, vector<1x8x128xi32>
    %91 = vector.shape_cast %90 : vector<1x8x128xi32> to vector<8x128xi32>
    %92 = arith.cmpf olt, %61, %89 : vector<8x128xf32>
    %93 = arith.select %92, %61, %89 : vector<8x128xi1>, vector<8x128xf32>
    %c2_59 = arith.constant 2 : index
    %c0_60 = arith.constant 0 : index
    %c0_61 = arith.constant 0 : index
    %94 = vector.load %arg7[%c2_59, %c0_60, %c0_61] : memref<3x8x128xf32, #tpu.memory_space<vmem>>, vector<1x8x128xf32>
    %95 = vector.shape_cast %94 : vector<1x8x128xf32> to vector<8x128xf32>
    %96 = vector.shape_cast %93 : vector<8x128xf32> to vector<1x8x128xf32>
    tpu.vector_store %arg7[%c2_59, %c0_60, %c0_61], %96 {strides = array<i32>} : memref<3x8x128xf32, #tpu.memory_space<vmem>>, vector<1x8x128xf32>,
    %97 = arith.select %92, %13, %91 : vector<8x128xi1>, vector<8x128xi32>
    %c2_62 = arith.constant 2 : index
    %c0_63 = arith.constant 0 : index
    %c0_64 = arith.constant 0 : index
    %98 = vector.load %arg8[%c2_62, %c0_63, %c0_64] : memref<3x8x128xi32, #tpu.memory_space<vmem>>, vector<1x8x128xi32>
    %99 = vector.shape_cast %98 : vector<1x8x128xi32> to vector<8x128xi32>
    %100 = vector.shape_cast %97 : vector<8x128xi32> to vector<1x8x128xi32>
    tpu.vector_store %arg8[%c2_62, %c0_63, %c0_64], %100 {strides = array<i32>} : memref<3x8x128xi32, #tpu.memory_space<vmem>>, vector<1x8x128xi32>,
    %c0_i32_65 = arith.constant 0 : i32
    %101 = arith.cmpi eq, %arg2, %c0_i32_65 : i32
    %102 = arith.extui %101 : i1 to i32
    %c0_i32_66 = arith.constant 0 : i32
    %103 = arith.cmpi ne, %102, %c0_i32_66 : i32
    scf.if %103 {
      %104 = tpu.iota {dimensions = array<i32: 0>} : vector<3x1xi32>
      %cst = arith.constant 0.000000e+00 : f32
      %105 = vector.broadcast %cst : f32 to vector<3x1xf32>
      %c0_i32_67 = arith.constant 0 : i32
      %106 = vector.broadcast %c0_i32_67 : i32 to vector<3x1xi32>
      %c0_68 = arith.constant 0 : index
      %c0_69 = arith.constant 0 : index
      %c0_70 = arith.constant 0 : index
      %107 = vector.load %arg7[%c0_68, %c0_69, %c0_70] : memref<3x8x128xf32, #tpu.memory_space<vmem>>, vector<1x8x128xf32>
      %108 = vector.shape_cast %107 : vector<1x8x128xf32> to vector<8x128xf32>
      %109 = vector.shape_cast %108 : vector<8x128xf32> to vector<1x8x128xf32>
      %cst_71 = arith.constant dense<0x7F800000> : vector<1xf32>
      %110 = vector.multi_reduction <minimumf>, %109, %cst_71 [1, 2] : vector<1x8x128xf32> to vector<1xf32>
      %111 = vector.shape_cast %110 : vector<1xf32> to vector<1x1x1xf32>
      %112 = vector.extract %111[0, 0, 0] : f32 from vector<1x1x1xf32>
      %113 = vector.broadcast %112 : f32 to vector<8x128xf32>
      %114 = arith.cmpf oeq, %108, %113 : vector<8x128xf32>
      %c0_72 = arith.constant 0 : index
      %c0_73 = arith.constant 0 : index
      %c0_74 = arith.constant 0 : index
      %115 = vector.load %arg8[%c0_72, %c0_73, %c0_74] : memref<3x8x128xi32, #tpu.memory_space<vmem>>, vector<1x8x128xi32>
      %116 = vector.shape_cast %115 : vector<1x8x128xi32> to vector<8x128xi32>
      %c2147483647_i32 = arith.constant 2147483647 : i32
      %117 = vector.broadcast %c2147483647_i32 : i32 to vector<8x128xi32>
      %118 = arith.select %114, %116, %117 : vector<8x128xi1>, vector<8x128xi32>
      %119 = vector.shape_cast %118 : vector<8x128xi32> to vector<1x8x128xi32>
      %cst_75 = arith.constant dense<2147483647> : vector<1xi32>
      %120 = vector.multi_reduction <minsi>, %119, %cst_75 [1, 2] : vector<1x8x128xi32> to vector<1xi32>
      %121 = vector.shape_cast %120 : vector<1xi32> to vector<1x1x1xi32>
      %122 = vector.extract %121[0, 0, 0] : i32 from vector<1x1x1xi32>
      %c0_i32_76 = arith.constant 0 : i32
      %123 = vector.broadcast %c0_i32_76 : i32 to vector<3x1xi32>
      %124 = arith.cmpi eq, %104, %123 : vector<3x1xi32>
      %125 = vector.broadcast %112 : f32 to vector<3x1xf32>
      %126 = arith.select %124, %125, %105 : vector<3x1xi1>, vector<3x1xf32>
      %c0_i32_77 = arith.constant 0 : i32
      %127 = vector.broadcast %c0_i32_77 : i32 to vector<3x1xi32>
      %128 = arith.cmpi eq, %104, %127 : vector<3x1xi32>
      %129 = vector.broadcast %122 : i32 to vector<3x1xi32>
      %130 = arith.select %128, %129, %106 : vector<3x1xi1>, vector<3x1xi32>
      %c1_78 = arith.constant 1 : index
      %c0_79 = arith.constant 0 : index
      %c0_80 = arith.constant 0 : index
      %131 = vector.load %arg7[%c1_78, %c0_79, %c0_80] : memref<3x8x128xf32, #tpu.memory_space<vmem>>, vector<1x8x128xf32>
      %132 = vector.shape_cast %131 : vector<1x8x128xf32> to vector<8x128xf32>
      %133 = vector.shape_cast %132 : vector<8x128xf32> to vector<1x8x128xf32>
      %cst_81 = arith.constant dense<0x7F800000> : vector<1xf32>
      %134 = vector.multi_reduction <minimumf>, %133, %cst_81 [1, 2] : vector<1x8x128xf32> to vector<1xf32>
      %135 = vector.shape_cast %134 : vector<1xf32> to vector<1x1x1xf32>
      %136 = vector.extract %135[0, 0, 0] : f32 from vector<1x1x1xf32>
      %137 = vector.broadcast %136 : f32 to vector<8x128xf32>
      %138 = arith.cmpf oeq, %132, %137 : vector<8x128xf32>
      %c1_82 = arith.constant 1 : index
      %c0_83 = arith.constant 0 : index
      %c0_84 = arith.constant 0 : index
      %139 = vector.load %arg8[%c1_82, %c0_83, %c0_84] : memref<3x8x128xi32, #tpu.memory_space<vmem>>, vector<1x8x128xi32>
      %140 = vector.shape_cast %139 : vector<1x8x128xi32> to vector<8x128xi32>
      %c2147483647_i32_85 = arith.constant 2147483647 : i32
      %141 = vector.broadcast %c2147483647_i32_85 : i32 to vector<8x128xi32>
      %142 = arith.select %138, %140, %141 : vector<8x128xi1>, vector<8x128xi32>
      %143 = vector.shape_cast %142 : vector<8x128xi32> to vector<1x8x128xi32>
      %cst_86 = arith.constant dense<2147483647> : vector<1xi32>
      %144 = vector.multi_reduction <minsi>, %143, %cst_86 [1, 2] : vector<1x8x128xi32> to vector<1xi32>
      %145 = vector.shape_cast %144 : vector<1xi32> to vector<1x1x1xi32>
      %146 = vector.extract %145[0, 0, 0] : i32 from vector<1x1x1xi32>
      %c1_i32_87 = arith.constant 1 : i32
      %147 = vector.broadcast %c1_i32_87 : i32 to vector<3x1xi32>
      %148 = arith.cmpi eq, %104, %147 : vector<3x1xi32>
      %149 = vector.broadcast %136 : f32 to vector<3x1xf32>
      %150 = arith.select %148, %149, %126 : vector<3x1xi1>, vector<3x1xf32>
      %c1_i32_88 = arith.constant 1 : i32
      %151 = vector.broadcast %c1_i32_88 : i32 to vector<3x1xi32>
      %152 = arith.cmpi eq, %104, %151 : vector<3x1xi32>
      %153 = vector.broadcast %146 : i32 to vector<3x1xi32>
      %154 = arith.select %152, %153, %130 : vector<3x1xi1>, vector<3x1xi32>
      %c2_89 = arith.constant 2 : index
      %c0_90 = arith.constant 0 : index
      %c0_91 = arith.constant 0 : index
      %155 = vector.load %arg7[%c2_89, %c0_90, %c0_91] : memref<3x8x128xf32, #tpu.memory_space<vmem>>, vector<1x8x128xf32>
      %156 = vector.shape_cast %155 : vector<1x8x128xf32> to vector<8x128xf32>
      %157 = vector.shape_cast %156 : vector<8x128xf32> to vector<1x8x128xf32>
      %cst_92 = arith.constant dense<0x7F800000> : vector<1xf32>
      %158 = vector.multi_reduction <minimumf>, %157, %cst_92 [1, 2] : vector<1x8x128xf32> to vector<1xf32>
      %159 = vector.shape_cast %158 : vector<1xf32> to vector<1x1x1xf32>
      %160 = vector.extract %159[0, 0, 0] : f32 from vector<1x1x1xf32>
      %161 = vector.broadcast %160 : f32 to vector<8x128xf32>
      %162 = arith.cmpf oeq, %156, %161 : vector<8x128xf32>
      %c2_93 = arith.constant 2 : index
      %c0_94 = arith.constant 0 : index
      %c0_95 = arith.constant 0 : index
      %163 = vector.load %arg8[%c2_93, %c0_94, %c0_95] : memref<3x8x128xi32, #tpu.memory_space<vmem>>, vector<1x8x128xi32>
      %164 = vector.shape_cast %163 : vector<1x8x128xi32> to vector<8x128xi32>
      %c2147483647_i32_96 = arith.constant 2147483647 : i32
      %165 = vector.broadcast %c2147483647_i32_96 : i32 to vector<8x128xi32>
      %166 = arith.select %162, %164, %165 : vector<8x128xi1>, vector<8x128xi32>
      %167 = vector.shape_cast %166 : vector<8x128xi32> to vector<1x8x128xi32>
      %cst_97 = arith.constant dense<2147483647> : vector<1xi32>
      %168 = vector.multi_reduction <minsi>, %167, %cst_97 [1, 2] : vector<1x8x128xi32> to vector<1xi32>
      %169 = vector.shape_cast %168 : vector<1xi32> to vector<1x1x1xi32>
      %170 = vector.extract %169[0, 0, 0] : i32 from vector<1x1x1xi32>
      %c2_i32 = arith.constant 2 : i32
      %171 = vector.broadcast %c2_i32 : i32 to vector<3x1xi32>
      %172 = arith.cmpi eq, %104, %171 : vector<3x1xi32>
      %173 = vector.broadcast %160 : f32 to vector<3x1xf32>
      %174 = arith.select %172, %173, %150 : vector<3x1xi1>, vector<3x1xf32>
      %c2_i32_98 = arith.constant 2 : i32
      %175 = vector.broadcast %c2_i32_98 : i32 to vector<3x1xi32>
      %176 = arith.cmpi eq, %104, %175 : vector<3x1xi32>
      %177 = vector.broadcast %170 : i32 to vector<3x1xi32>
      %178 = arith.select %176, %177, %154 : vector<3x1xi1>, vector<3x1xi32>
      %c0_99 = arith.constant 0 : index
      %c0_100 = arith.constant 0 : index
      %c0_101 = arith.constant 0 : index
      %c0_102 = arith.constant 0 : index
      %179 = vector.load %arg5[%c0_99, %c0_100, %c0_101, %c0_102] : memref<1x1x3x1xf32, #tpu.memory_space<vmem>>, vector<1x1x3x1xf32>
      %180 = vector.shape_cast %179 : vector<1x1x3x1xf32> to vector<3x1xf32>
      %181 = vector.shape_cast %174 : vector<3x1xf32> to vector<1x1x3x1xf32>
      tpu.vector_store %arg5[%c0_99, %c0_100, %c0_101, %c0_102], %181 {strides = array<i32>} : memref<1x1x3x1xf32, #tpu.memory_space<vmem>>, vector<1x1x3x1xf32>,
      %c0_103 = arith.constant 0 : index
      %c0_104 = arith.constant 0 : index
      %c0_105 = arith.constant 0 : index
      %c0_106 = arith.constant 0 : index
      %182 = vector.load %arg6[%c0_103, %c0_104, %c0_105, %c0_106] : memref<1x1x3x1xi32, #tpu.memory_space<vmem>>, vector<1x1x3x1xi32>
      %183 = vector.shape_cast %182 : vector<1x1x3x1xi32> to vector<3x1xi32>
      %184 = vector.shape_cast %178 : vector<3x1xi32> to vector<1x1x3x1xi32>
      tpu.vector_store %arg6[%c0_103, %c0_104, %c0_105, %c0_106], %184 {strides = array<i32>} : memref<1x1x3x1xi32, #tpu.memory_space<vmem>>, vector<1x1x3x1xi32>,
    } else {
    }
    return
  }
  func.func @transform_0(%arg0: i32, %arg1: i32, %arg2: i32) -> (i32, i32, i32, i32) {
    %c1_i32 = arith.constant 1 : i32
    %0 = arith.muli %arg1, %c1_i32 : i32
    %1 = arith.addi %0, %arg2 : i32
    %c0_i32 = arith.constant 0 : i32
    %c0_i32_0 = arith.constant 0 : i32
    %c0_i32_1 = arith.constant 0 : i32
    return %arg0, %c0_i32, %1, %c0_i32_0 : i32, i32, i32, i32
  }
  func.func @transform_1(%arg0: i32, %arg1: i32, %arg2: i32) -> (i32, i32) {
    %c0_i32 = arith.constant 0 : i32
    %c0_i32_0 = arith.constant 0 : i32
    %c0_i32_1 = arith.constant 0 : i32
    return %c0_i32, %c0_i32_0 : i32, i32
  }
  func.func @transform_2(%arg0: i32, %arg1: i32, %arg2: i32) -> (i32, i32, i32, i32) {
    %c0_i32 = arith.constant 0 : i32
    %c0_i32_0 = arith.constant 0 : i32
    %c0_i32_1 = arith.constant 0 : i32
    return %arg0, %arg1, %c0_i32, %c0_i32_0 : i32, i32, i32, i32
  }
  func.func @transform_3(%arg0: i32, %arg1: i32, %arg2: i32) -> (i32, i32, i32, i32) {
    %c0_i32 = arith.constant 0 : i32
    %c0_i32_0 = arith.constant 0 : i32
    %c0_i32_1 = arith.constant 0 : i32
    return %arg0, %arg1, %c0_i32, %c0_i32_0 : i32, i32, i32, i32
  }
}

</mosaic_0001>

<bundles_post_ra>
// kernel: tpu_custom_call.1
= control target key start
LH: loop header
LB: loop body
LE: loop exit
PB: predicated region body
PF: predicated region fallthrough
CT: control target
= control target key end

     0   :  { %9 = vsyncpa [#allocation5], 0  ;;  %s1065_s0 = inlined_call_operand.hbm [shape: f32[2,3,8,128], index: 0, kind: input, shape index: {}]   ;;  %s1066_s1 = inlined_call_operand.hbm [shape: f32[3,3], index: 1, kind: input, shape index: {}]   ;;  %s1067_s2 = inlined_call_operand.vmem [shape: f32[2,1,3,1], index: 2, kind: output, shape index: {0}]   ;;  %s1068_s3 = inlined_call_operand.vmem [shape: s32[2,1,3,1], index: 3, kind: output, shape index: {1}]  }
   0x1   :  { %11 = vsyncpa [#allocation5 + $0x1], 0 }
   0x2   :  { %12 = vsyncpa [#allocation6], 0  ;;  %s848_s12 = smov 0   ;;  %s850_s13 = smov 0  }
   0x3   :  { %s852_s14 = smov 0   ;;  %s854_s15 = smov 0  }
   0x4   :  { %s856_s16 = smov 0   ;;  %s858_s17 = smov 0  }
   0x5 LB: > { %s620_s18 = sadd.s32 4294967295, %s822_s17   ;;  %s48_s19 = sadd.s32 1, %s810_s14  ;;  %s822_s17 = sphi %s858_s17, %s18_s17   ;;  %s818_s16 = sphi %s856_s16, %s1082_s16   ;;  %s814_s15 = sphi %s854_s15, %s1081_s15   ;;  %s810_s14 = sphi %s852_s14, %s1080_s14   ;;  %s806_s13 = sphi %s850_s13, %s1079_s13   ;;  %s802_s12 = sphi %s848_s12, %s1078_s12  }
   0x6   : > { %p55_p0 = scmp.ne.s32.totalorder %s810_s14, %s806_s13  ;;  %p56_p1 = scmp.eq.s32.totalorder %s822_s17, 0 }
   0x7   : > { %p61_p2 = scmp.ne.s32.totalorder %s806_s13, %s802_s12  ;;  %p882_p3 = scmp.eq.s32.totalorder %s620_s18, 0 }
   0x8   : > { %p57_p4 = por %p56_p1, %p55_p0  ;;  %p622_p5 = scmp.ge.s32.totalorder %s822_s17, 1 }
   0x9   : > { %s1072_s20 = scalar_select %p882_p3, 1, 0 }
   0xa   : > { %p889_p6 = por %p882_p3, %p61_p2  ;;  %p149_p7 = scmp.lt.s32.totalorder %s822_s17, 3 }
   0xb   : > { %p672_p9 = scmp.lt.s32.totalorder %s822_s17, 2  ;;  %s37_s24 = sadd.s32 1, %s818_s16 }
   0xc   : > { %s1073_s21 = scalar_select %p889_p6, 1, 0 }
   0xd   : > { %p894_p8 = pnand %p622_p5, %p149_p7  ;;  %p901_p11 = pnand %p672_p9, %p57_p4 }
   0xe   : > { %p39_p13 = scmp.ge.s32.totalorder %s37_s24, 2  ;;  %s171_s25 = sand.u32 1, %s810_s14  }
   0xf   : > { %p663_p10 = pneg %p894_p8  ;;  %s725_s28 = scalar_lea.hbm %s1066_s1, 64 }
  0x10   : > { %p726_p0 = scmp.ne.s32.totalorder %s1066_s1, %s725_s28  ;;  %p732_p4 = scmp.lt.u32.totalorder %s725_s28, %s1066_s1 }
  0x11   : > { %p664_p12 = pnand %p663_p10, %p882_p3 }
  0x13   : > { %p727_p1 = pneg %p664_p12 }
  0x15   : > { %p728_p2 = pnand %p727_p1, %p726_p0 }
  0x17   : > { %p729_p5 = pneg %p728_p2 }
  0x19   : > { %p734_p7 = pnand %p732_p4, %p729_p5 }
  0x1b   : > { %737 = shalt.err (!%p734_p7)
}
  0x1c   : > { %s824_s6 = smov [#allocation7]   ;;  %s1084_s24 = smov (%p39_p13, %s37_s24), 0 }
  0x1d   : > { %666 = dma.hbm_to_smem (!%p664_p12), %s1066_s1, 64, %s824_s6, [#allocation6]  }
  0x1e   : > { %s642_s9 = smul.u32 24, %s171_s25  ;;  %s43_s10 = ssub.s32 %s818_s16, %s1084_s24 }
  0x1f   : > { %s643_s11 = smul.u32 384, %s818_s16  ;;  %p46_p9 = scmp.eq.s32.totalorder %s43_s10, 0 }
  0x20   : > { %s175_s27 = scalar_lea.vmem [#allocation4], %s642_s9  ;;  %s938_s30 = scalar_lea.sflag [#allocation5], %s171_s25 }
  0x21   : > { %s929_s26 = scalar_lea.hbm %s1065_s0, %s643_s11  ;;  %s184_s28 = sshll.u32 %s175_s27, 4  ;;  %s936_s28 = int_to_ptr.vmem [resolvable:$true] %s184_s28 }
  0x22   : > { %s934_s29 = scalar_select %p46_p9, %s810_s14, %s48_s19  }
  0x23   : > { %s738_s4 = scalar_lea.hbm %s929_s26, 384  ;;  %p740_p12 = pneg %p901_p11 }
  0x24   : > { %p739_p10 = scmp.ne.s32.totalorder %s929_s26, %s738_s4  ;;  %s743_s7 = scalar_lea.hbm %s1065_s0, 768 }
  0x25   : > { %p744_p1 = scmp.lt.u32.totalorder %s929_s26, %s1065_s0  ;;  %p745_p2 = scmp.lt.u32.totalorder %s743_s7, %s738_s4 }
  0x26   : > { %p741_p13 = pnand %p740_p12, %p739_p10  ;;  %p747_p4 = scmp.lt.u32.totalorder %s738_s4, %s929_s26 }
  0x27   : > { %p746_p5 = por %p745_p2, %p744_p1 }
  0x28   : > { %p742_p0 = pneg %p741_p13 }
  0x29   : > { %p748_p7 = por %p747_p4, %p746_p5 }
  0x2b   : > { %p749_p9 = pnand %p748_p7, %p742_p0 }
  0x2d   : > { %752 = shalt.err (!%p749_p9)
}
  0x2e   : > { %s753_s19 = scalar_lea.vmem %s936_s28, 384  ;;  %s825_s25 = smov [#allocation4]  }
  0x2f   : > { %p754_p10 = scmp.ne.s32.totalorder %s936_s28, %s753_s19  ;;  %s758_s10 = sshll.u32 %s825_s25, 4  ;;  %s759_s10 = int_to_ptr.vmem [resolvable:$false] %s758_s10 }
  0x30   : > { %s760_s11 = scalar_lea.vmem %s759_s10, 768  ;;  %p761_p6 = scmp.lt.s32.totalorder %s936_s28, %s759_s10 }
  0x31   : > { %p756_p13 = pnand %p754_p10, %p740_p12  ;;  %p762_p1 = scmp.lt.s32.totalorder %s760_s11, %s753_s19 }
  0x33   : > { %p757_p3 = pneg %p756_p13  ;;  %p763_p2 = por %p762_p1, %p761_p6 }
  0x35   : > { %p764_p5 = pnand %p763_p2, %p757_p3 }
  0x37   : > { %767 = shalt.err (!%p764_p5)
}
  0x38   : > { %s826_s12 = smov 128   ;;  %s827_s18 = smov 8  }
  0x39   : > { %670 = dma.hbm_to_vmem [thread:$0]  (!%p901_p11), %s929_s26, 384, %s936_s28, %s938_s30, %s826_s12, %s826_s12, %s827_s18  }
  0x3a   : > { %196 = sbr.rel (%p894_p8) target bundleno = 1374 (0x55e), region = 28  ;;  %s198_s27 = sand.u32 (!%p894_p8), 1, %s806_s13  }
  0x3b   : > { %s644_s4 = smul.u32 (!%p894_p8), 24, %s198_s27  ;;  %s199_s5 = scalar_lea.sflag (!%p894_p8), [#allocation5], %s198_s27 }
  0x3c   : > { %p1076_p6 = scmp.ne.s32.totalorder (!%p894_p8), %s1073_s21, 0 }
  0x3d   : > { %s202_s6 = scalar_lea.vmem (!%p894_p8), [#allocation4], %s644_s4 }
  0x41   : > { %793 = dma.done.wait (%p1076_p6), %s199_s5, 384  }
  0x42   : > { %795 = vsyncadd (%p1076_p6), %s199_s5, 4294966912  ;;  %p1077_p3 = scmp.ne.s32.totalorder %s1072_s20, 0 }
  0x44   : > { %797 = dma.done.wait (%p1077_p3), [#allocation6], 64  }
  0x45   : > { %799 = vsyncadd (%p1077_p3), [#allocation6], 4294967232 }
  0x46   : > { %211 = sfence }
  0x47   : > { %s275_s22 = sld [smem:[#allocation7]]  ;;  %s633_s23 = sld [smem:[#allocation7 + $0x1]]  ;;  %v977_v0 = vld [vmem:[%s202_s6] sm:$0xff]  ;;  %v979_v1 = vld [vmem:[%s202_s6 + $0x8] sm:$0xff]  ;;  %v981_v2 = vld [vmem:[%s202_s6 + $0x10] sm:$0xff]  ;;  %v264_v22 = vlaneseq }
  0x48   : > { %s637_s26 = sld [smem:[#allocation7 + $0x2]]  ;;  %s630_s21 = sld [smem:[#allocation7 + $0x80]] }
  0x49   : > { %v987_v23 = vshrl.u32 %v264_v22, 7  ;;  %v267_v24 = vand.u32 127, %v264_v22  ;;  %s634_s28 = sld [smem:[#allocation7 + $0x81]]  ;;  %s638_s30 = sld [smem:[#allocation7 + $0x82]] }
  0x4a   : > { %s631_s9 = sld [smem:[#allocation7 + $0x100]]  ;;  %s635_s19 = sld [smem:[#allocation7 + $0x101]] }
  0x4b   : > { %v272_v25 = vmul.u32 128, %v987_v23  ;;  %vm387_vm7 = vcmp.eq.s32.totalorder %v987_v23, 0  ;;  %vm429_vm8 = vcmp.eq.s32.totalorder %v987_v23, 1  ;;  %s639_s25 = sld [smem:[#allocation7 + $0x102]]  ;;  %p240_p8 = scmp.lt.s32.totalorder %s814_s15, 1  ;;  %vm471_vm15 = vcmp.eq.s32.totalorder %v987_v23, 2 }
  0x4d   : > { %v276_v3 = vstv %s275_s22  ;;  %v290_v4 = vstv %s633_s23  ;;  %v990_v26 = vadd.s32 %v272_v25, %v267_v24  ;;  %s1086_s15 = smov (!%p240_p8, %s814_s15), 1 }
  0x4e   : > { %v277_v5 = vsub.f32 %v977_v0, %v276_v3  ;;  %v291_v6 = vsub.f32 %v979_v1, %v290_v4  ;;  %v307_v7 = vstv %s637_s26  ;;  %v280_v32 = vstv %s630_s21  ;;  %s628_s10 = sshll.u32 %s1086_s15, 2 }
  0x4f   : > { %v308_v8 = vsub.f32 %v981_v2, %v307_v7  ;;  %v295_v33 = vstv %s634_s28  ;;  %v281_v34 = vsub.f32 %v977_v0, %v280_v32  ;;  %v312_v36 = vstv %s638_s30  ;;  %s246_s27 = scalar_lea.vmem %s1067_s2, %s628_s10  ;;  %s253_s22 = scalar_lea.vmem %s1068_s3, %s628_s10 }
  0x50   : > { %v278_v9 = vand.u32 2147483647, %v277_v5  ;;  %v292_v10 = vand.u32 2147483647, %v291_v6  ;;  %v296_v35 = vsub.f32 %v979_v1, %v295_v33  ;;  %v313_v39 = vsub.f32 %v981_v2, %v312_v36 }
  0x51   : > { %v309_v11 = vand.u32 2147483647, %v308_v8  ;;  %v282_v37 = vand.u32 2147483647, %v281_v34 }
  0x52   : > { %v293_v12 = vadd.f32 %v292_v10, %v278_v9  ;;  %v297_v38 = vand.u32 2147483647, %v296_v35  ;;  %v314_v41 = vand.u32 2147483647, %v313_v39 }
  0x54   : > { %v310_v13 = vadd.f32 %v309_v11, %v293_v12  ;;  %v298_v40 = vadd.f32 %v297_v38, %v282_v37  ;;  %v284_v12 = vstv %s631_s9 }
  0x56   : > { %vm323_vm0 = vcmp.lt.f32.partialorder %v310_v13, inf  ;;  %v315_v43 = vadd.f32 %v314_v41, %v298_v40 }
  0x57   : > { %v324_v14 = vsel %vm323_vm0, %v310_v13, inf  ;;  %v326_v27 = vsel %vm323_vm0, %v990_v26, 0  ;;  %v300_v13 = vstv %s635_s19  ;;  %vm475_vm0 = vcmask 2048  }
  0x58   : > { %350 = vmin.xlane.f32.xlu0 %v324_v14  ;;  %vm332_vm3 = vcmp.lt.f32.partialorder %v315_v43, inf }
  0x59   : > { %v333_v47 = vsel %vm332_vm3, %v315_v43, inf  ;;  %v335_v5 = vsel %vm332_vm3, %v990_v26, 0 }
  0xe5   : > { %v351_v15 = vpop.xlane.xlu0 %350 }
  0xe6   : > { %v352_v16 = vrot.slane %v351_v15, 4 }
  0xe8   : > { %v353_v17 = vmin.f32 %v351_v15, %v352_v16  ;;  %v301_v15 = vsub.f32 %v979_v1, %v300_v13  ;;  %v317_v16 = vstv %s639_s25 }
  0xea   : > { %v354_v18 = vrot.slane %v353_v17, 2 }
  0xec   : > { %v355_v19 = vmin.f32 %v353_v17, %v354_v18  ;;  %v302_v18 = vand.u32 2147483647, %v301_v15 }
  0xee   : > { %v356_v20 = vrot.slane %v355_v19, 1 }
  0xf0   : > { %v357_v21 = vmin.f32 %v355_v19, %v356_v20  ;;  %v318_v19 = vsub.f32 %v981_v2, %v317_v16 }
  0xf2   : > { %645 = vpush %v357_v21  ;;  %v319_v21 = vand.u32 2147483647, %v318_v19 }
 0x123   : > { %s994_s20 = spop %645 }
 0x124   : > { %v359_v28 = vstv %s994_s20 }
 0x125   : > { %vm360_vm1 = vcmp.eq.f32.partialorder %v324_v14, %v359_v28  ;;  %v388_v6 = vsel %vm387_vm7, %v359_v28, 0.0  ;;  %v285_v14 = vsub.f32 %v977_v0, %v284_v12 }
 0x126   : > { %v362_v29 = vsel %vm360_vm1, %v326_v27, 2147483647 }
 0x127   : > { %v364_v30 = vshra.s32 %v362_v29, 16  ;;  %v363_v42 = vand.u32 65535, %v362_v29  ;;  %v286_v17 = vand.u32 2147483647, %v285_v14 }
 0x129   : > { %v366_v31 = vcvt.s32.f32 %v364_v30  ;;  %v365_v45 = vcvt.s32.f32 %v363_v42  ;;  %v303_v20 = vadd.f32 %v302_v18, %v286_v17 }
 0x12b   : > { %367 = vmin.xlane.f32.xlu0 %v366_v31  ;;  %v320_v22 = vadd.f32 %v319_v21, %v303_v20 }
 0x12d   : > { %vm341_vm10 = vcmp.lt.f32.partialorder %v320_v22, inf }
 0x12e   : > { %v342_v24 = vsel %vm341_vm10, %v320_v22, inf }
 0x1b8   : > { %v368_v44 = vpop.xlane.xlu0 %367 }
 0x1b9   : > { %vm369_vm2 = vcmp.eq.f32.partialorder %v366_v31, %v368_v44  ;;  %v374_v48 = vcvt.f32.s32 %v368_v44 }
 0x1ba   : > { %v370_v46 = vsel %vm369_vm2, %v365_v45, inf }
 0x1bb   : > { %371 = vmin.xlane.f32.xlu1 %v370_v46  ;;  %v375_v50 = vshll.u32 %v374_v48, 16 }
 0x1bf   : > { %392 = vmin.xlane.f32.xlu1 %v333_v47 }
 0x248   : > { %v372_v49 = vpop.xlane.xlu1 %371 }
 0x249   : > { %v373_v51 = vcvt.f32.s32 %v372_v49 }
 0x24b   : > { %v376_v52 = vadd.s32 %v375_v50, %v373_v51 }
 0x24c   : > { %v393_v53 = vpop.xlane.xlu1 %392 }
 0x24d   : > { %v377_v54 = vrot.slane %v376_v52, 4  ;;  %v394_v55 = vrot.slane %v393_v53, 4 }
 0x24f   : > { %vm378_vm4 = vcmp.lt.s32.totalorder %v376_v52, %v377_v54  ;;  %v395_v56 = vmin.f32 %v393_v53, %v394_v55 }
 0x250   : > { %v379_v57 = vsel %vm378_vm4, %v376_v52, %v377_v54 }
 0x251   : > { %v396_v58 = vrot.slane %v395_v56, 2  ;;  %v380_v59 = vrot.slane %v379_v57, 2 }
 0x253   : > { %vm381_vm5 = vcmp.lt.s32.totalorder %v379_v57, %v380_v59  ;;  %v397_v60 = vmin.f32 %v395_v56, %v396_v58 }
 0x254   : > { %v382_v61 = vsel %vm381_vm5, %v379_v57, %v380_v59 }
 0x255   : > { %v383_v62 = vrot.slane %v382_v61, 1  ;;  %v398_v63 = vrot.slane %v397_v60, 1 }
 0x257   : > { %vm384_vm6 = vcmp.lt.s32.totalorder %v382_v61, %v383_v62  ;;  %v399_v3 = vmin.f32 %v397_v60, %v398_v63 }
 0x258   : > { %v385_v4 = vsel %vm384_vm6, %v382_v61, %v383_v62 }
 0x259   : > { %647 = vpush %v385_v4 }
 0x25a   : > { %649 = vpush %v399_v3 }
 0x28a   : > { %s1002_s7 = spop %647 }
 0x28b   : > { %s650_s8 = spop %649  ;;  %v389_v45 = vstv %s1002_s7 }
 0x28c   : > { %v401_v7 = vstv %s650_s8  ;;  %v390_v46 = vsel %vm387_vm7, %v389_v45, 0 }
 0x28d   : > { %vm402_vm9 = vcmp.eq.f32.partialorder %v333_v47, %v401_v7  ;;  %v1011_v8 = vsel %vm429_vm8, %v401_v7, %v388_v6  ;;  %v344_v47 = vsel %vm341_vm10, %v990_v26, 0 }
 0x28e   : > { %v404_v9 = vsel %vm402_vm9, %v335_v5, 2147483647 }
 0x28f   : > { %v406_v10 = vshra.s32 %v404_v9, 16  ;;  %v405_v25 = vand.u32 65535, %v404_v9 }
 0x291   : > { %v408_v11 = vcvt.s32.f32 %v406_v10  ;;  %v407_v28 = vcvt.s32.f32 %v405_v25 }
 0x293   : > { %409 = vmin.xlane.f32.xlu0 %v408_v11 }
 0x297   : > { %434 = vmin.xlane.f32.xlu0 %v342_v24 }
 0x320   : > { %v410_v27 = vpop.xlane.xlu0 %409 }
 0x321   : > { %vm411_vm11 = vcmp.eq.f32.partialorder %v408_v11, %v410_v27  ;;  %v416_v30 = vcvt.f32.s32 %v410_v27 }
 0x322   : > { %v412_v29 = vsel %vm411_vm11, %v407_v28, inf }
 0x323   : > { %413 = vmin.xlane.f32.xlu1 %v412_v29  ;;  %v417_v33 = vshll.u32 %v416_v30, 16 }
 0x324   : > { %v435_v0 = vpop.xlane.xlu0 %434 }
 0x325   : > { %v436_v1 = vrot.slane %v435_v0, 4 }
 0x327   : > { %v437_v31 = vmin.f32 %v435_v0, %v436_v1 }
 0x329   : > { %v438_v35 = vrot.slane %v437_v31, 2 }
 0x32b   : > { %v439_v38 = vmin.f32 %v437_v31, %v438_v35 }
 0x32d   : > { %v440_v41 = vrot.slane %v439_v38, 1 }
 0x32f   : > { %v441_v44 = vmin.f32 %v439_v38, %v440_v41 }
 0x3b0   : > { %v414_v32 = vpop.xlane.xlu1 %413 }
 0x3b1   : > { %v415_v2 = vcvt.f32.s32 %v414_v32 }
 0x3b3   : > { %v418_v34 = vadd.s32 %v417_v33, %v415_v2 }
 0x3b5   : > { %v419_v36 = vrot.slane %v418_v34, 4 }
 0x3b7   : > { %vm420_vm12 = vcmp.lt.s32.totalorder %v418_v34, %v419_v36 }
 0x3b8   : > { %v421_v37 = vsel %vm420_vm12, %v418_v34, %v419_v36 }
 0x3b9   : > { %v422_v39 = vrot.slane %v421_v37, 2 }
 0x3bb   : > { %vm423_vm13 = vcmp.lt.s32.totalorder %v421_v37, %v422_v39 }
 0x3bc   : > { %v424_v40 = vsel %vm423_vm13, %v421_v37, %v422_v39 }
 0x3bd   : > { %v425_v42 = vrot.slane %v424_v40, 1 }
 0x3bf   : > { %vm426_vm14 = vcmp.lt.s32.totalorder %v424_v40, %v425_v42 }
 0x3c0   : > { %v427_v43 = vsel %vm426_vm14, %v424_v40, %v425_v42 }
 0x3c1   : > { %651 = vpush %v427_v43 }
 0x3c2   : > { %653 = vpush %v441_v44 }
 0x3f2   : > { %s652_s11 = spop %651 }
 0x3f3   : > { %v431_v48 = vstv %s652_s11  ;;  %s654_s4 = spop %653 }
 0x3f4   : > { %v432_v49 = vsel %vm429_vm8, %v431_v48, %v390_v46  ;;  %v443_v50 = vstv %s654_s4 }
 0x3f5   : > { %vm444_vm1 = vcmp.eq.f32.partialorder %v342_v24, %v443_v50  ;;  %v472_v51 = vsel %vm471_vm15, %v443_v50, %v1011_v8 }
 0x3f6   : > { %v446_v52 = vsel %vm444_vm1, %v344_v47, 2147483647  ;;  %476 = vst.msk [vmem:[%s246_s27] sm:$0x7] %vm475_vm0, %v472_v51 }
 0x3f7   : > { %v448_v26 = vshra.s32 %v446_v52, 16  ;;  %v447_v54 = vand.u32 65535, %v446_v52 }
 0x3f9   : > { %v450_v53 = vcvt.s32.f32 %v448_v26  ;;  %v449_v56 = vcvt.s32.f32 %v447_v54 }
 0x3fb   : > { %451 = vmin.xlane.f32.xlu1 %v450_v53 }
 0x488   : > { %v452_v55 = vpop.xlane.xlu1 %451 }
 0x489   : > { %vm453_vm2 = vcmp.eq.f32.partialorder %v450_v53, %v452_v55  ;;  %v458_v58 = vcvt.f32.s32 %v452_v55 }
 0x48a   : > { %v454_v57 = vsel %vm453_vm2, %v449_v56, inf }
 0x48b   : > { %455 = vmin.xlane.f32.xlu0 %v454_v57  ;;  %v459_v60 = vshll.u32 %v458_v58, 16 }
 0x518   : > { %v456_v59 = vpop.xlane.xlu0 %455 }
 0x519   : > { %v457_v61 = vcvt.f32.s32 %v456_v59 }
 0x51b   : > { %v460_v62 = vadd.s32 %v459_v60, %v457_v61 }
 0x51d   : > { %v461_v63 = vrot.slane %v460_v62, 4 }
 0x51f   : > { %vm462_vm3 = vcmp.lt.s32.totalorder %v460_v62, %v461_v63 }
 0x520   : > { %v463_v3 = vsel %vm462_vm3, %v460_v62, %v461_v63 }
 0x521   : > { %v464_v4 = vrot.slane %v463_v3, 2 }
 0x523   : > { %vm465_vm4 = vcmp.lt.s32.totalorder %v463_v3, %v464_v4 }
 0x524   : > { %v466_v5 = vsel %vm465_vm4, %v463_v3, %v464_v4 }
 0x525   : > { %v467_v6 = vrot.slane %v466_v5, 1 }
 0x527   : > { %vm468_vm5 = vcmp.lt.s32.totalorder %v466_v5, %v467_v6 }
 0x528   : > { %v469_v7 = vsel %vm468_vm5, %v466_v5, %v467_v6 }
 0x529   : > { %655 = vpush %v469_v7 }
 0x55a   : > { %s656_s23 = spop %655 }
 0x55b   : > { %v473_v8 = vstv %s656_s23 }
 0x55c   : > { %v474_v9 = vsel %vm471_vm15, %v473_v8, %v432_v49 }
 0x55d   : > { %477 = vst.msk [vmem:[%s253_s22] sm:$0x7] %vm475_vm0, %v474_v9 }
 0x55e PF: > { %s18_s17 = sadd.s32 1, %s822_s17   ;;  %s1078_s12 = smov %s806_s13 }
 0x55f   : > { %p15_p11 = scmp.ge.s32.totalorder %s18_s17, 4   ;;  %s1079_s13 = smov %s810_s14 }
 0x560   : > { %s1080_s14 = smov %s934_s29  ;;  %s1081_s15 = smov %s818_s16 }
 0x561   : > { %s1082_s16 = smov %s1084_s24  ;;  %17 = sbr.rel (!%p15_p11) target bundleno = 5 (0x5), region = 99 }
 0x568   :  { %523 = vsyncpa [#allocation5], 1 }
 0x569   :  { %525 = vsyncpa [#allocation5 + $0x1], 1 }
 0x56a   :  { %526 = vsyncpa [#allocation6], 1 }
 0x56b   :  { %528 = vsyncpa [#allocation6 + $0x1], 1 }

</bundles_post_ra>
